<compile_context>
chip_gen: v7x
topology: tpu7x:2x2x1
jax: 0.10.0
libtpu: 0.0.40
codegen_flags: <defaults>
</compile_context>

<pallas_src>
import functools

import jax
import jax.numpy as jnp
from jax.experimental import pallas as pl
from jax.experimental.pallas import tpu as pltpu


_VMEM_LIMIT_BYTES = 48 * 1024 * 1024     # safe on v7x (64 MiB) and v5e/v6e (128 MiB)
_FUSED_SLAB_BUDGET = 10 * 1024 * 1024    # max per-batch (C, L) slab for the fused path
_FUSED_BLOCK_TARGET = 4 * 1024 * 1024    # preferred fused block size (Bt * slab)
_STREAM_TILE_BUDGET = 8 * 1024 * 1024    # (C, lt) tile budget for the fallback path


# ----------------------------------------------------------------------------
# Kernels
# ----------------------------------------------------------------------------
def _fused_se_kernel(x_ref, w1_ref, w2_ref, o_ref, *, inv_len):
    """mean -> FC -> ReLU -> FC -> sigmoid -> scale, one pass over the block."""
    x = x_ref[...]                                               # (Bt, C, L)
    y = jnp.sum(x.astype(jnp.float32), axis=-1) * inv_len        # (Bt, C)
    h = jnp.maximum(
        jnp.dot(y, w1_ref[...].astype(jnp.float32),
                preferred_element_type=jnp.float32), 0.0)        # (Bt, Cr)
    s = jax.nn.sigmoid(
        jnp.dot(h, w2_ref[...].astype(jnp.float32),
                preferred_element_type=jnp.float32))             # (Bt, C)
    o_ref[...] = (x * s[:, :, None].astype(x.dtype)).astype(o_ref.dtype)


def _mean_kernel(x_ref, m_ref, acc_ref, *, inv_len, length, l_tile, need_mask):
    """Accumulate per-(b, c) mean over (possibly ragged) L tiles."""
    l = pl.program_id(1)

    @pl.when(l == 0)
    def _():
        acc_ref[...] = jnp.zeros_like(acc_ref)

    x = x_ref[...].astype(jnp.float32)                           # (1, C, lt)
    if need_mask:
        # cdiv grid: zero out the out-of-range lanes of the last tile.
        pos = l * l_tile + jax.lax.broadcasted_iota(jnp.int32, x.shape, 2)
        x = jnp.where(pos < length, x, 0.0)
    acc_ref[...] += jnp.sum(x, axis=-1)                          # (1, C)

    @pl.when(l == pl.num_programs(1) - 1)
    def _():
        m_ref[...] = (acc_ref[...] * inv_len)[:, :, None]        # (1, C, 1) f32


def _scale_kernel(x_ref, s_ref, o_ref):
    """out = x * gate, multiply in the input dtype (gate kept f32 in HBM)."""
    x = x_ref[...]                                               # (1, C, lt)
    o_ref[...] = (x * s_ref[...].astype(x.dtype)).astype(o_ref.dtype)


# ----------------------------------------------------------------------------
# Tiling helpers
# ----------------------------------------------------------------------------
def _pick_batch_tile(B, slab_bytes, target_bytes):
    """Largest divisor of B whose (Bt, C, L) block stays within target_bytes,
    while keeping >= 2 grid steps (when B > 1) so both v7x TensorCores get
    work."""
    fitting = [d for d in range(1, B + 1)
               if B % d == 0 and d * slab_bytes <= target_bytes]
    if not fitting:
        return 1
    bt = max(fitting)
    if bt == B and B > 1:
        smaller = [d for d in fitting if d < B]
        if smaller:
            bt = max(smaller)
    return bt


def _pick_l_tile(C, L, itemsize, budget_bytes):
    """Largest lane-aligned (multiple-of-128) L tile within the VMEM budget.
    Non-multiple-of-128 L is handled with a cdiv grid + in-kernel masking, so
    the tile never needs to cover the whole (possibly huge) length."""
    if L <= 128:
        return L
    by_budget = max(128, (budget_bytes // max(1, C * itemsize)) // 128 * 128)
    by_shape = (L // 128) * 128          # largest aligned tile not exceeding L
    return min(by_budget, by_shape)


# ----------------------------------------------------------------------------
# Public wrapper
# ----------------------------------------------------------------------------
def se_layer(x, w1, w2, *, force_two_stage=False, l_tile=None):
    """SELayer forward. x: (B, C, L); w1: (C, C//r); w2: (C//r, C)."""
    B, C, L = x.shape
    Cr = w1.shape[1]
    itemsize = jnp.dtype(x.dtype).itemsize
    slab_bytes = C * L * itemsize
    inv_len = 1.0 / L

    # ------------------------- fused single-pass path -----------------------
    if not force_two_stage and slab_bytes <= _FUSED_SLAB_BUDGET:
        bt = _pick_batch_tile(B, slab_bytes, _FUSED_BLOCK_TARGET)
        return pl.pallas_call(
            functools.partial(_fused_se_kernel, inv_len=inv_len),
            out_shape=jax.ShapeDtypeStruct((B, C, L), x.dtype),
            grid_spec=pltpu.PrefetchScalarGridSpec(
                num_scalar_prefetch=0,
                grid=(B // bt,),
                in_specs=[
                    pl.BlockSpec((bt, C, L), lambda b: (b, 0, 0)),
                    pl.BlockSpec((C, Cr), lambda b: (0, 0)),
                    pl.BlockSpec((Cr, C), lambda b: (0, 0)),
                ],
                out_specs=pl.BlockSpec((bt, C, L), lambda b: (b, 0, 0)),
            ),
            compiler_params=pltpu.CompilerParams(
                dimension_semantics=("parallel",),
                vmem_limit_bytes=_VMEM_LIMIT_BYTES),
            cost_estimate=pl.CostEstimate(
                flops=2 * B * C * L + 4 * B * C * Cr,
                transcendentals=B * C,
                bytes_accessed=2 * B * C * L * itemsize
                + 2 * C * Cr * jnp.dtype(w1.dtype).itemsize),
        )(x, w1, w2)

    # --------------- two-stage streaming fallback (huge C*L slabs) ----------
    lt = l_tile if l_tile is not None else _pick_l_tile(
        C, L, itemsize, _STREAM_TILE_BUDGET)
    n_l = pl.cdiv(L, lt)
    need_mask = (L % lt) != 0

    # Stage 1: per-(b, c) means in f32, streaming x once.
    means = pl.pallas_call(
        functools.partial(_mean_kernel, inv_len=inv_len, length=L,
                          l_tile=lt, need_mask=need_mask),
        out_shape=jax.ShapeDtypeStruct((B, C, 1), jnp.float32),
        grid_spec=pltpu.PrefetchScalarGridSpec(
            num_scalar_prefetch=0,
            grid=(B, n_l),
            in_specs=[pl.BlockSpec((1, C, lt), lambda b, l: (b, 0, l))],
            out_specs=pl.BlockSpec((1, C, 1), lambda b, l: (b, 0, 0)),
            scratch_shapes=[pltpu.VMEM((1, C), jnp.float32)],
        ),
        compiler_params=pltpu.CompilerParams(
            dimension_semantics=("parallel", "arbitrary"),
            vmem_limit_bytes=_VMEM_LIMIT_BYTES),
        cost_estimate=pl.CostEstimate(
            flops=B * C * L,
            transcendentals=0,
            bytes_accessed=B * C * L * itemsize + B * C * 4),
    )(x)

    # Tiny FCs + sigmoid, batched over B as one XLA matmul (f32 gate).
    y = means[:, :, 0]
    h = jnp.maximum(y @ w1.astype(jnp.float32), 0.0)
    gate = jax.nn.sigmoid(h @ w2.astype(jnp.float32))[:, :, None]   # (B, C, 1) f32

    # Stage 2: lane-dense tiled elementwise scale (OOB tail stores are dropped).
    out = pl.pallas_call(
        _scale_kernel,
        out_shape=jax.ShapeDtypeStruct((B, C, L), x.dtype),
        grid_spec=pltpu.PrefetchScalarGridSpec(
            num_scalar_prefetch=0,
            grid=(B, n_l),
            in_specs=[
                pl.BlockSpec((1, C, lt), lambda b, l: (b, 0, l)),
                pl.BlockSpec((1, C, 1), lambda b, l: (b, 0, 0)),
            ],
            out_specs=pl.BlockSpec((1, C, lt), lambda b, l: (b, 0, l)),
        ),
        compiler_params=pltpu.CompilerParams(
            dimension_semantics=("parallel", "parallel"),
            vmem_limit_bytes=_VMEM_LIMIT_BYTES),
        cost_estimate=pl.CostEstimate(
            flops=B * C * L,
            transcendentals=0,
            bytes_accessed=2 * B * C * L * itemsize + B * C * 4),
    )(x, gate)
    return out


# ----------------------------------------------------------------------------
# Reference & test harness
# ----------------------------------------------------------------------------
def init_params(channel, reduction, key):
    """Synthetic init mirroring nn.Linear(bias=False); weights stored transposed."""
    cr = max(1, channel // reduction)
    k1, k2 = jax.random.split(key)
    bound1 = 1.0 / (channel ** 0.5)
    bound2 = 1.0 / (cr ** 0.5)
    w1 = jax.random.uniform(k1, (channel, cr), jnp.float32, -bound1, bound1)
    w2 = jax.random.uniform(k2, (cr, channel), jnp.float32, -bound2, bound2)
    return w1, w2


def se_layer_ref(x, w1, w2):
    """Pure-JAX reference."""
    y = jnp.mean(x, axis=-1)
    h = jnp.maximum(y @ w1, 0.0)
    s = jax.nn.sigmoid(h @ w2)
    return x * s[:, :, None]


if __name__ == "__main__":
    reduction = 16
    key = jax.random.PRNGKey(0)

    # Case 1: fused single-pass path with batch tiling (Bt=2, grid of 2).
    B, C, L = 4, 32, 384
    kx, kp, key = jax.random.split(key, 3)
    x = jax.random.normal(kx, (B, C, L), jnp.float32)
    w1, w2 = init_params(C, reduction, kp)
    out = jax.block_until_ready(se_layer(x, w1, w2))
    ref = se_layer_ref(x, w1, w2)
    assert out.shape == (B, C, L)
    assert jnp.allclose(out, ref, atol=1e-5, rtol=1e-5)

    # Case 2: fused path with L not a multiple of 128 (full-slab block).
    B2, C2, L2 = 2, 32, 200
    kx2, kp2, key = jax.random.split(key, 3)
    x2 = jax.random.normal(kx2, (B2, C2, L2), jnp.float32)
    w1b, w2b = init_params(C2, reduction, kp2)
    out2 = jax.block_until_ready(se_layer(x2, w1b, w2b))
    ref2 = se_layer_ref(x2, w1b, w2b)
    assert jnp.allclose(out2, ref2, atol=1e-5, rtol=1e-5)

    # Case 3: same data through the two-stage streaming fallback (small l_tile
    # forces the masked cdiv L-tiling that very large C*L slabs would use).
    out3 = jax.block_until_ready(
        se_layer(x2, w1b, w2b, force_two_stage=True, l_tile=128))
    assert jnp.allclose(out3, ref2, atol=1e-5, rtol=1e-5)

    print("KERNEL_OK")
</pallas_src>

<mosaic_0001>
module attributes {stable_mosaic.version = 11 : i64} {
  func.func @_fused_se_kernel(%arg0: i32, %arg1: memref<2x32x384xf32, #tpu.memory_space<vmem>>, %arg2: memref<32x2xf32, #tpu.memory_space<vmem>>, %arg3: memref<2x32xf32, #tpu.memory_space<vmem>>, %arg4: memref<2x32x384xf32, #tpu.memory_space<vmem>>) attributes {dimension_semantics = [#tpu.dimension_semantics<parallel>], iteration_bounds = array<i64: 2>, scalar_prefetch = 0 : i64, scratch_operands = 0 : i64, tpu.core_type = #tpu.core_type<tc>, window_params = [{transform_indices = @transform_0, window_bounds = array<i64: 2, 32, 384>}, {pipeline_mode = #tpu.pipeline_mode<synchronous>, transform_indices = @transform_1, window_bounds = array<i64: 32, 2>}, {pipeline_mode = #tpu.pipeline_mode<synchronous>, transform_indices = @transform_2, window_bounds = array<i64: 2, 32>}, {transform_indices = @transform_3, window_bounds = array<i64: 2, 32, 384>}]} {
    %c0 = arith.constant 0 : index
    %c0_0 = arith.constant 0 : index
    %c0_1 = arith.constant 0 : index
    %0 = vector.load %arg1[%c0, %c0_0, %c0_1] : memref<2x32x384xf32, #tpu.memory_space<vmem>>, vector<2x32x384xf32>
    %cst = arith.constant dense<0.000000e+00> : vector<2x32xf32>
    %1 = vector.multi_reduction <add>, %0, %cst [2] : vector<2x32x384xf32> to vector<2x32xf32>
    %cst_2 = arith.constant 0.00260416674 : f32
    %2 = vector.broadcast %cst_2 : f32 to vector<2x32xf32>
    %3 = arith.mulf %1, %2 : vector<2x32xf32>
    %c0_3 = arith.constant 0 : index
    %c0_4 = arith.constant 0 : index
    %4 = vector.load %arg2[%c0_3, %c0_4] : memref<32x2xf32, #tpu.memory_space<vmem>>, vector<32x2xf32>
    %cst_5 = arith.constant dense<0.000000e+00> : vector<2x2xf32>
    %5 = tpu.matmul %3, %4, %cst_5 {dimension_numbers = #tpu.dot_dimension_numbers<[1], [0], [0], [1], [0, 0, 1, 1], [], []>} : vector<2x32xf32>, vector<32x2xf32>, vector<2x2xf32> -> vector<2x2xf32>
    %cst_6 = arith.constant 0.000000e+00 : f32
    %6 = vector.broadcast %cst_6 : f32 to vector<2x2xf32>
    %7 = arith.maximumf %5, %6 : vector<2x2xf32>
    %c0_7 = arith.constant 0 : index
    %c0_8 = arith.constant 0 : index
    %8 = vector.load %arg3[%c0_7, %c0_8] : memref<2x32xf32, #tpu.memory_space<vmem>>, vector<2x32xf32>
    %cst_9 = arith.constant dense<0.000000e+00> : vector<2x32xf32>
    %9 = tpu.matmul %7, %8, %cst_9 {dimension_numbers = #tpu.dot_dimension_numbers<[1], [0], [0], [1], [0, 0, 1, 1], [], []>} : vector<2x2xf32>, vector<2x32xf32>, vector<2x32xf32> -> vector<2x32xf32>
    %10 = arith.negf %9 : vector<2x32xf32>
    %11 = math.exp %10 : vector<2x32xf32>
    %cst_10 = arith.constant 1.000000e+00 : f32
    %12 = vector.broadcast %cst_10 : f32 to vector<2x32xf32>
    %13 = arith.addf %12, %11 : vector<2x32xf32>
    %14 = arith.divf %12, %13 : vector<2x32xf32>
    %15 = vector.shape_cast %14 : vector<2x32xf32> to vector<2x32x1xf32>
    %16 = vector.broadcast %15 : vector<2x32x1xf32> to vector<2x32x384xf32>
    %17 = arith.mulf %0, %16 : vector<2x32x384xf32>
    %c0_11 = arith.constant 0 : index
    %c0_12 = arith.constant 0 : index
    %c0_13 = arith.constant 0 : index
    %18 = vector.load %arg4[%c0_11, %c0_12, %c0_13] : memref<2x32x384xf32, #tpu.memory_space<vmem>>, vector<2x32x384xf32>
    tpu.vector_store %arg4[%c0_11, %c0_12, %c0_13], %17 {strides = array<i32>} : memref<2x32x384xf32, #tpu.memory_space<vmem>>, vector<2x32x384xf32>,
    return
  }
  func.func @transform_0(%arg0: i32) -> (i32, i32, i32) {
    %c0_i32 = arith.constant 0 : i32
    %c0_i32_0 = arith.constant 0 : i32
    %c0_i32_1 = arith.constant 0 : i32
    return %arg0, %c0_i32, %c0_i32_0 : i32, i32, i32
  }
  func.func @transform_1(%arg0: i32) -> (i32, i32) {
    %c0_i32 = arith.constant 0 : i32
    %c0_i32_0 = arith.constant 0 : i32
    %c0_i32_1 = arith.constant 0 : i32
    return %c0_i32, %c0_i32_0 : i32, i32
  }
  func.func @transform_2(%arg0: i32) -> (i32, i32) {
    %c0_i32 = arith.constant 0 : i32
    %c0_i32_0 = arith.constant 0 : i32
    %c0_i32_1 = arith.constant 0 : i32
    return %c0_i32, %c0_i32_0 : i32, i32
  }
  func.func @transform_3(%arg0: i32) -> (i32, i32, i32) {
    %c0_i32 = arith.constant 0 : i32
    %c0_i32_0 = arith.constant 0 : i32
    %c0_i32_1 = arith.constant 0 : i32
    return %arg0, %c0_i32, %c0_i32_0 : i32, i32, i32
  }
}

</mosaic_0001>

<bundles_post_ra>
// kernel: tpu_custom_call.1
= control target key start
LH: loop header
LB: loop body
LE: loop exit
PB: predicated region body
PF: predicated region fallthrough
CT: control target
= control target key end

     0   :  { %8 = vsyncpa [#allocation3], 0  ;;  %s1206_s0 = inlined_call_operand.hbm [shape: f32[4,32,384], index: 0, kind: input, shape index: {}]   ;;  %s1207_s1 = inlined_call_operand.vmem [shape: f32[32,2], index: 1, kind: input, shape index: {}]   ;;  %s1208_s2 = inlined_call_operand.vmem [shape: f32[2,32], index: 2, kind: input, shape index: {}]   ;;  %s1209_s3 = inlined_call_operand.hbm [shape: f32[4,32,384], index: 3, kind: output, shape index: {}]  }
   0x1   :  { %10 = vsyncpa [#allocation3 + $0x1], 0 }
   0x2   :  { %11 = vsyncpa [#allocation4], 0 }
   0x3   :  { %13 = vsyncpa [#allocation4 + $0x1], 0  ;;  %s882_s12 = smov 0   ;;  %s884_s13 = smov 0  }
   0x4   :  { %s886_s14 = smov 0   ;;  %s888_s15 = smov 0  }
   0x5 LB: > { %s903_s16 = sadd.s32 4294967295, %s851_s15   ;;  %s649_s17 = sadd.s32 4294967294, %s851_s15   ;;  %s851_s15 = sphi %s888_s15, %s1221_s15   ;;  %s847_s14 = sphi %s886_s14, %s1220_s14   ;;  %s843_s13 = sphi %s884_s13, %s1219_s13   ;;  %s839_s12 = sphi %s882_s12, %s1218_s12  }
   0x6   : > { %s907_s18 = sadd.s32 1, %s851_s15   ;;  %s26_s19 = sadd.s32 1, %s847_s14 }
   0x7   : > { %s23_s20 = ssub.s32 %s851_s15, %s907_s18  ;;  %p33_p0 = scmp.ne.s32.totalorder %s847_s14, %s843_s13 }
   0x8   : > { %p24_p1 = scmp.eq.s32.totalorder %s23_s20, 0  ;;  %p34_p2 = scmp.eq.s32.totalorder %s851_s15, 0 }
   0x9   : > { %p39_p3 = scmp.ne.s32.totalorder %s843_s13, %s839_s12  ;;  %p40_p4 = scmp.eq.s32.totalorder %s903_s16, 0 }
   0xa   : > { %s919_s21 = scalar_select %p24_p1, %s847_s14, %s26_s19  }
   0xb   : > { %p35_p5 = por %p34_p2, %p33_p0  ;;  %p921_p6 = por %p40_p4, %p39_p3 }
   0xc   : > { %p105_p7 = scmp.eq.s32.totalorder %s903_s16, 1  ;;  %p111_p8 = scmp.eq.s32.totalorder %s649_s17, 1 }
   0xd   : > { %p710_p10 = scmp.lt.s32.totalorder %s851_s15, 2  ;;  %s137_s25 = sand.u32 1, %s847_s14  }
   0xe   : > { %p928_p11 = por %p105_p7, %p33_p0  ;;  %p932_p12 = por %p111_p8, %p39_p3 }
   0xf   : > { %s695_s26 = smul.u32 3072, %s851_s15  ;;  %p943_p13 = pnand %p710_p10, %p35_p5 }
  0x10   : > { %s1212_s23 = scalar_select %p928_p11, 1, 0 }
  0x11   : > { %s1213_s24 = scalar_select %p932_p12, 1, 0 }
  0x12   : > { %s694_s27 = smul.u32 192, %s137_s25  ;;  %s941_s30 = scalar_lea.hbm %s1206_s0, %s695_s26 }
  0x13   : > { %s949_s7 = scalar_lea.sflag [#allocation3], %s137_s25  ;;  %s755_s8 = scalar_lea.hbm %s941_s30, 3072 }
  0x14   : > { %s141_s5 = scalar_lea.vmem [#allocation2], %s694_s27  ;;  %p756_p0 = scmp.ne.s32.totalorder %s941_s30, %s755_s8 }
  0x15   : > { %s149_s6 = sshll.u32 %s141_s5, 4  ;;  %p757_p1 = pneg %p943_p13  ;;  %s947_s6 = int_to_ptr.vmem [resolvable:$true] %s149_s6 }
  0x16   : > { %s760_s11 = scalar_lea.hbm %s1206_s0, 6144  ;;  %p761_p4 = scmp.lt.u32.totalorder %s941_s30, %s1206_s0 }
  0x17   : > { %p758_p2 = pnand %p757_p1, %p756_p0  ;;  %p762_p5 = scmp.lt.u32.totalorder %s760_s11, %s755_s8 }
  0x18   : > { %p764_p8 = scmp.lt.u32.totalorder %s755_s8, %s941_s30 }
  0x19   : > { %p759_p3 = pneg %p758_p2  ;;  %p763_p7 = por %p762_p5, %p761_p4 }
  0x1b   : > { %p765_p10 = por %p764_p8, %p763_p7 }
  0x1d   : > { %p766_p9 = pnand %p765_p10, %p759_p3 }
  0x1f   : > { %769 = shalt.err (!%p766_p9)
}
  0x20   : > { %s770_s20 = scalar_lea.vmem %s947_s6, 3072  ;;  %s853_s25 = smov [#allocation2]  }
  0x21   : > { %p771_p0 = scmp.ne.s32.totalorder %s947_s6, %s770_s20  ;;  %s775_s26 = sshll.u32 %s853_s25, 4  ;;  %s776_s26 = int_to_ptr.vmem [resolvable:$false] %s775_s26 }
  0x22   : > { %s777_s27 = scalar_lea.vmem %s776_s26, 6144  ;;  %p778_p11 = scmp.lt.s32.totalorder %s947_s6, %s776_s26 }
  0x23   : > { %p773_p2 = pnand %p771_p0, %p757_p1  ;;  %p779_p4 = scmp.lt.s32.totalorder %s777_s27, %s770_s20 }
  0x25   : > { %p774_p12 = pneg %p773_p2  ;;  %p780_p5 = por %p779_p4, %p778_p11 }
  0x27   : > { %p781_p7 = pnand %p780_p5, %p774_p12 }
  0x29   : > { %784 = shalt.err (!%p781_p7)
}
  0x2a   : > { %s854_s28 = smov 384   ;;  %s855_s29 = smov 24  }
  0x2b   : > { %705 = dma.hbm_to_vmem [thread:$0]  (!%p943_p13), %s941_s30, 3072, %s947_s6, %s949_s7, %s854_s28, %s854_s28, %s855_s29  }
  0x2c   : > { %p655_p9 = scmp.ge.s32.totalorder %s851_s15, 1  ;;  %p157_p1 = scmp.lt.s32.totalorder %s851_s15, 3 }
  0x2e   : > { %p158_p3 = pnand %p655_p9, %p157_p1 }
  0x2f   : > { %s980_s5 = sand.u32 (!%p158_p3), 1, %s843_s13  }
  0x30   : > { %161 = sbr.rel (%p158_p3) target bundleno = 825 (0x339), region = 32  ;;  %s164_s9 = scalar_lea.sflag (!%p158_p3), [#allocation3], %s980_s5 }
  0x31   : > { %s696_s8 = smul.u32 (!%p158_p3), 192, %s980_s5 }
  0x33   : > { %s986_s10 = scalar_lea.vmem (!%p158_p3), [#allocation2], %s696_s8 }
  0x37   : > { %830 = dma.done.wait (%p921_p6), %s164_s9, 3072  }
  0x38   : > { %832 = vsyncadd (%p921_p6), %s164_s9, 4294964224  ;;  %v993_v0 = vld [vmem:[%s986_s10 + $0x60] sm:$0xff]  ;;  %v996_v1 = vld [vmem:[%s986_s10 + $0x68] sm:$0xff]  ;;  %v856_v43 = vmov 0.0|0.0   ;;  %vm857_vm0 = vmmov 0   ;;  %v858_v47 = vmov 0.0   ;;  %v268_v48 = vlaneseq }
  0x39   : > { %v999_v2 = vld [vmem:[%s986_s10 + $0x70] sm:$0xff]  ;;  %v232_v3 = vadd.f32 %v996_v1, %v993_v0  ;;  %v1004_v4 = vld [vmem:[%s986_s10] sm:$0xff]  ;;  %v1007_v5 = vld [vmem:[%s986_s10 + $0x8] sm:$0xff]  ;;  %688 = vmatprep.subr.bf16.mxu0 %v856_v43  ;;  %680 = vmatprep.mubr.msk.f32.mxu0 %vm857_vm0, %v858_v47  ;;  %vm279_vm1 = vcmask 130112   ;;  %vm286_vm2 = vcmask 195712   ;;  %vm293_vm3 = vcmask 261312  }
  0x3a   : > { %v1010_v6 = vld [vmem:[%s986_s10 + $0x10] sm:$0xff]  ;;  %v216_v7 = vadd.f32 %v1007_v5, %v1004_v4  ;;  %v1015_v8 = vld [vmem:[%s986_s10 + $0x78] sm:$0xff]  ;;  %v1018_v9 = vld [vmem:[%s986_s10 + $0x80] sm:$0xff]  ;;  %683 = vmatprep.subr.mxu1 %v858_v47  ;;  %685 = vmatprep.mubr.msk.f32.mxu1 %vm857_vm0, %v858_v47  ;;  %v269_v50 = vand.u32 127, %v268_v48  ;;  %v271_v55 = vshrl.u32 %v268_v48, 7  ;;  %vm314_vm4 = vcmask 1041409  }
  0x3b   : > { %v1021_v10 = vld [vmem:[%s986_s10 + $0x88] sm:$0xff]  ;;  %v233_v11 = vadd.f32 %v232_v3, %v999_v2  ;;  %v236_v12 = vadd.f32 %v1018_v9, %v1015_v8  ;;  %v1027_v13 = vld [vmem:[%s986_s10 + $0x18] sm:$0xff]  ;;  %v1030_v14 = vld [vmem:[%s986_s10 + $0x20] sm:$0xff]  ;;  %vm316_vm5 = vcmask 261120   ;;  %vm395_vm6 = vcmask 1041408   ;;  %s1111_s26 = scalar_lea.vmem [#allocation5], %s696_s8 }
  0x3c   : > { %v1033_v15 = vld [vmem:[%s986_s10 + $0x28] sm:$0xff]  ;;  %v217_v16 = vadd.f32 %v216_v7, %v1010_v6  ;;  %v220_v17 = vadd.f32 %v1030_v14, %v1027_v13  ;;  %v1039_v18 = vld [vmem:[%s986_s10 + $0x90] sm:$0xff]  ;;  %v1042_v19 = vld [vmem:[%s986_s10 + $0x98] sm:$0xff]  ;;  %v274_v52 = vadd.s32 4294967288, %v269_v50  ;;  %v281_v54 = vadd.s32 4294967280, %v269_v50  ;;  %s697_s27 = smul.u32 3072, %s903_s16 }
  0x3d   : > { %234 = vadd.xlane.f32.xlu1 %v233_v11  ;;  %v237_v20 = vadd.f32 %v236_v12, %v1021_v10  ;;  %v240_v21 = vadd.f32 %v1042_v19, %v1039_v18  ;;  %v1048_v22 = vld [vmem:[%s986_s10 + $0x30] sm:$0xff]  ;;  %v1051_v23 = vld [vmem:[%s986_s10 + $0x38] sm:$0xff]  ;;  %v1055_v25 = vld [vmem:[%s986_s10 + $0xa0] sm:$0xff]  ;;  %v288_v59 = vadd.s32 4294967272, %v269_v50  ;;  %v272_v63 = vsub.s32 %v269_v50, %v271_v55  ;;  %s576_s28 = sshll.u32 %s1111_s26, 4  ;;  %s562_s16 = scalar_lea.sflag [#allocation4], %s980_s5  ;;  %s1156_s28 = int_to_ptr.vmem [resolvable:$true] %s576_s28 }
  0x3e   : > { %218 = vadd.xlane.f32.xlu0 %v217_v16  ;;  %v221_v24 = vadd.f32 %v220_v17, %v1033_v15  ;;  %v224_v26 = vadd.f32 %v1051_v23, %v1048_v22  ;;  %v1060_v27 = vld [vmem:[%s986_s10 + $0xa8] sm:$0xff]  ;;  %v1063_v28 = vld [vmem:[%s986_s10 + $0xb0] sm:$0xff]  ;;  %v1066_v29 = vld [vmem:[%s986_s10 + $0x40] sm:$0xff]  ;;  %v277_v57 = vsub.s32 %v274_v52, %v271_v55  ;;  %v284_v61 = vsub.s32 %v281_v54, %v271_v55  ;;  %s1154_s9 = scalar_lea.hbm %s1209_s3, %s697_s27  ;;  %p1215_p11 = scmp.ne.s32.totalorder %s1212_s23, 0 }
  0x3f   : > { %v1069_v30 = vld [vmem:[%s986_s10 + $0x48] sm:$0xff]  ;;  %v1072_v31 = vld [vmem:[%s986_s10 + $0x50] sm:$0xff]  ;;  %v241_v32 = vadd.f32 %v240_v21, %v1055_v25  ;;  %v244_v33 = vadd.f32 %v1063_v28, %v1060_v27  ;;  %v1079_v35 = vld [vmem:[%s986_s10 + $0xb8] sm:$0xff]  ;;  %vm391_vm7 = vcmask 15360   ;;  %s859_s22 = smov [#allocation5]  }
  0x40   : > { %v225_v34 = vadd.f32 %v224_v26, %v1066_v29  ;;  %v228_v36 = vadd.f32 %v1072_v31, %v1069_v30  ;;  %v1084_v37 = vld [vmem:[%s986_s10 + $0x58] sm:$0xff]  ;;  %v256_v40 = vld [vmem:[%s1207_s1] sm:$0xff]  ;;  %v257_v41 = vld [vmem:[%s1207_s1 + $0x8] sm:$0xff]  ;;  %s785_s10 = scalar_lea.vmem %s1156_s28, 3072  ;;  %s789_s30 = sshll.u32 %s859_s22, 4  ;;  %s790_s30 = int_to_ptr.vmem [resolvable:$false] %s789_s30 }
  0x41   : > { %238 = vadd.xlane.f32.xlu1 %v237_v20  ;;  %v245_v38 = vadd.f32 %v244_v33, %v1079_v35  ;;  %v689_v42 = vpack.c.bf16 %v257_v41, %v256_v40  ;;  %v258_v44 = vld [vmem:[%s1207_s1 + $0x10] sm:$0xff]  ;;  %v259_v45 = vld [vmem:[%s1207_s1 + $0x18] sm:$0xff]  ;;  %v291_v20 = vsub.s32 %v288_v59, %v271_v55  ;;  %v477_v59 = vsub.s32 0, %v271_v55  ;;  %p786_p6 = scmp.ne.s32.totalorder %s1156_s28, %s785_s10  ;;  %s791_s4 = scalar_lea.vmem %s790_s30, 6144 }
  0x42   : > { %222 = vadd.xlane.f32.xlu0 %v221_v24  ;;  %v229_v39 = vadd.f32 %v228_v36, %v1084_v37  ;;  %v692_v46 = vpack.c.bf16 %v259_v45, %v258_v44  ;;  %p792_p8 = scmp.lt.s32.totalorder %s1156_s28, %s790_s30  ;;  %p793_p10 = scmp.lt.s32.totalorder %s791_s4, %s785_s10 }
  0x43   : > { %690 = vmatpush3.bf16.msra.mxu0 %v689_v42  ;;  %p787_p12 = pnand %p786_p6, %p1215_p11 }
  0x44   : > { %691 = vmatprep.subr.bf16.mxu0 %v856_v43  ;;  %p794_p0 = por %p793_p10, %p792_p8 }
  0x45   : > { %242 = vadd.xlane.f32.xlu1 %v241_v32  ;;  %p788_p13 = pneg %p787_p12 }
  0x46   : > { %226 = vadd.xlane.f32.xlu0 %v225_v34 }
  0x47   : > { %693 = vmatpush3.bf16.msra.mxu0 %v692_v46  ;;  %p795_p2 = pnand %p794_p0, %p788_p13 }
  0x49   : > { %246 = vadd.xlane.f32.xlu1 %v245_v38 }
  0x4a   : > { %230 = vadd.xlane.f32.xlu0 %v229_v39 }
  0xca   : > { %v235_v49 = vpop.xlane.xlu1 %234 }
  0xcb   : > { %v219_v51 = vpop.xlane.xlu0 %218  ;;  %v252_v3 = vmul.f32 0.0026041667, %v235_v49  ;;  %v390_v49 = vld [vmem:[%s1208_s2] sm:$0x3] }
  0xcc   : > { %v248_v12 = vmul.f32 0.0026041667, %v219_v51  ;;  %684 = vmatpush3.msk.msra.mxu1 %vm395_vm6, %v390_v49 }
  0xcd   : > { %v298_v32 = vrot.slane %v252_v3, %v272_v63 }
  0xce   : > { %v239_v53 = vpop.xlane.xlu1 %238  ;;  %v273_v38 = vrot.slane %v248_v12, %v272_v63 }
  0xcf   : > { %v223_v56 = vpop.xlane.xlu0 %222  ;;  %v253_v58 = vmul.f32 0.0026041667, %v239_v53 }
  0xd0   : > { %v249_v60 = vmul.f32 0.0026041667, %v223_v56 }
  0xd1   : > { %v302_v17 = vrot.slane %v253_v58, %v277_v57 }
  0xd2   : > { %v243_v62 = vpop.xlane.xlu1 %242  ;;  %v278_v21 = vrot.slane %v249_v60, %v277_v57 }
  0xd3   : > { %v254_v7 = vmul.f32 0.0026041667, %v243_v62  ;;  %v227_v11 = vpop.xlane.xlu0 %226  ;;  %v303_v40 = vsel %vm279_vm1, %v302_v17, %v298_v32  ;;  %v496_v62 = vsub.s32 1, %v271_v55 }
  0xd4   : > { %v250_v16 = vmul.f32 0.0026041667, %v227_v11  ;;  %v280_v42 = vsel %vm279_vm1, %v278_v21, %v273_v38 }
  0xd5   : > { %v307_v24 = vrot.slane %v254_v7, %v284_v61 }
  0xd6   : > { %v247_v26 = vpop.xlane.xlu1 %246  ;;  %v285_v33 = vrot.slane %v250_v16, %v284_v61 }
  0xd7   : > { %v255_v34 = vmul.f32 0.0026041667, %v247_v26  ;;  %v231_v36 = vpop.xlane.xlu0 %230  ;;  %v308_v43 = vsel %vm286_vm2, %v307_v24, %v303_v40 }
  0xd8   : > { %v251_v39 = vmul.f32 0.0026041667, %v231_v36  ;;  %v287_v45 = vsel %vm286_vm2, %v285_v33, %v280_v42 }
  0xd9   : > { %v312_v41 = vrot.slane %v255_v34, %v291_v20 }
  0xda   : > { %v292_v44 = vrot.slane %v251_v39, %v291_v20 }
  0xdb   : > { %v313_v46 = vsel %vm293_vm3, %v312_v41, %v308_v43 }
  0xdc   : > { %v294_v47 = vsel %vm293_vm3, %v292_v44, %v287_v45 }
  0xdd   : > { %v315_v48 = vsel %vm314_vm4, %v313_v46, %v294_v47 }
  0xde   : > { %681 = vmatmul.mubr.msk.f32.vlgmr.msra.gmra.mrb[0].mxu0 %vm316_vm5, %v315_v48 }
 0x1b1   : > { %v385_v50 = vpop.f32.mrb[0].mxu0 }
 0x1b2   : > { %v389_v51 = vmax.f32 %v385_v50, 0.0  ;;  %v682_v52 = vpop.f32.mrb[1].mxu0 }
 0x1b4   : > { %686 = vmatmul.mubr.msk.f32.vlgmr.msra.gmra.mrb[0].mxu1 %vm391_vm7, %v389_v51 }
 0x287   : > { %v465_v53 = vpop.f32.mrb[0].mxu1 }
 0x288   : > { %v659_v54 = vmul.f32 -1.442695, %v465_v53  ;;  %v687_v56 = vpop.f32.mrb[1].mxu1 }
 0x28a   : > { %751 = vpow2.f32 %v659_v54 }
 0x294   : > { %v752_v57 = vpop.eup %751 }
 0x295   : > { %v472_v58 = vadd.f32 1.0, %v752_v57 }
 0x297   : > { %753 = vrcp.f32 %v472_v58 }
 0x2a1   : > { %v754_v60 = vpop.eup %753 }
 0x2a2   : > { %v478_v61 = vrot.slane %v754_v60, %v477_v59  ;;  %v497_v63 = vrot.slane %v754_v60, %v496_v62 }
 0x2a4   : > { %484 = vbcast.lane.b32.xlu1 %v478_v61, 264  ;;  %480 = vbcast.lane.b32.xlu0 %v478_v61, 256 }
 0x2a8   : > { %488 = vbcast.lane.b32.xlu1 %v478_v61, 272  ;;  %499 = vbcast.lane.b32.xlu0 %v497_v63, 256 }
 0x2ac   : > { %492 = vbcast.lane.b32.xlu1 %v478_v61, 280  ;;  %507 = vbcast.lane.b32.xlu0 %v497_v63, 272 }
 0x2b0   : > { %503 = vbcast.lane.b32.xlu1 %v497_v63, 264 }
 0x2b4   : > { %511 = vbcast.lane.b32.xlu1 %v497_v63, 280 }
 0x316   : > { %v485_v3 = vpop.permute.xlu1 %484  ;;  %v481_v7 = vpop.permute.xlu0 %480 }
 0x317   : > { %v516_v11 = vmul.f32 %v485_v3, %v1027_v13  ;;  %v517_v12 = vmul.f32 %v485_v3, %v1030_v14  ;;  %v518_v16 = vmul.f32 %v485_v3, %v1033_v15  ;;  %v513_v55 = vmul.f32 %v481_v7, %v1004_v4 }
 0x318   : > { %v514_v17 = vmul.f32 %v481_v7, %v1007_v5  ;;  %v515_v20 = vmul.f32 %v481_v7, %v1010_v6 }
 0x319   : > { %540 = vst [vmem:[%s1111_s26 + $0x18] sm:$0xff] %v516_v11  ;;  %541 = vst [vmem:[%s1111_s26 + $0x20] sm:$0xff] %v517_v12 }
 0x31a   : > { %542 = vst [vmem:[%s1111_s26 + $0x28] sm:$0xff] %v518_v16  ;;  %537 = vst [vmem:[%s1111_s26] sm:$0xff] %v513_v55  ;;  %v489_v4 = vpop.permute.xlu1 %488  ;;  %v500_v5 = vpop.permute.xlu0 %499 }
 0x31b   : > { %538 = vst [vmem:[%s1111_s26 + $0x8] sm:$0xff] %v514_v17  ;;  %539 = vst [vmem:[%s1111_s26 + $0x10] sm:$0xff] %v515_v20  ;;  %v519_v6 = vmul.f32 %v489_v4, %v1048_v22  ;;  %v520_v13 = vmul.f32 %v489_v4, %v1051_v23  ;;  %v521_v14 = vmul.f32 %v489_v4, %v1066_v29 }
 0x31c   : > { %v525_v15 = vmul.f32 %v500_v5, %v993_v0  ;;  %v526_v21 = vmul.f32 %v500_v5, %v996_v1  ;;  %v527_v24 = vmul.f32 %v500_v5, %v999_v2 }
 0x31d   : > { %543 = vst [vmem:[%s1111_s26 + $0x30] sm:$0xff] %v519_v6  ;;  %544 = vst [vmem:[%s1111_s26 + $0x38] sm:$0xff] %v520_v13 }
 0x31e   : > { %545 = vst [vmem:[%s1111_s26 + $0x40] sm:$0xff] %v521_v14  ;;  %549 = vst [vmem:[%s1111_s26 + $0x60] sm:$0xff] %v525_v15  ;;  %v493_v22 = vpop.permute.xlu1 %492  ;;  %v508_v23 = vpop.permute.xlu0 %507 }
 0x31f   : > { %550 = vst [vmem:[%s1111_s26 + $0x68] sm:$0xff] %v526_v21  ;;  %551 = vst [vmem:[%s1111_s26 + $0x70] sm:$0xff] %v527_v24  ;;  %v522_v0 = vmul.f32 %v493_v22, %v1069_v30  ;;  %v523_v1 = vmul.f32 %v493_v22, %v1072_v31  ;;  %v524_v2 = vmul.f32 %v493_v22, %v1084_v37 }
 0x320   : > { %v531_v29 = vmul.f32 %v508_v23, %v1039_v18  ;;  %v532_v26 = vmul.f32 %v508_v23, %v1042_v19  ;;  %v533_v32 = vmul.f32 %v508_v23, %v1055_v25 }
 0x321   : > { %546 = vst [vmem:[%s1111_s26 + $0x48] sm:$0xff] %v522_v0  ;;  %547 = vst [vmem:[%s1111_s26 + $0x50] sm:$0xff] %v523_v1 }
 0x322   : > { %548 = vst [vmem:[%s1111_s26 + $0x58] sm:$0xff] %v524_v2  ;;  %555 = vst [vmem:[%s1111_s26 + $0x90] sm:$0xff] %v531_v29  ;;  %v504_v30 = vpop.permute.xlu1 %503 }
 0x323   : > { %556 = vst [vmem:[%s1111_s26 + $0x98] sm:$0xff] %v532_v26  ;;  %557 = vst [vmem:[%s1111_s26 + $0xa0] sm:$0xff] %v533_v32  ;;  %v528_v31 = vmul.f32 %v504_v30, %v1015_v8  ;;  %v529_v18 = vmul.f32 %v504_v30, %v1018_v9  ;;  %v530_v19 = vmul.f32 %v504_v30, %v1021_v10 }
 0x325   : > { %552 = vst [vmem:[%s1111_s26 + $0x78] sm:$0xff] %v528_v31  ;;  %553 = vst [vmem:[%s1111_s26 + $0x80] sm:$0xff] %v529_v18 }
 0x326   : > { %554 = vst [vmem:[%s1111_s26 + $0x88] sm:$0xff] %v530_v19  ;;  %v512_v25 = vpop.permute.xlu1 %511 }
 0x327   : > { %v534_v8 = vmul.f32 %v512_v25, %v1060_v27  ;;  %v535_v9 = vmul.f32 %v512_v25, %v1063_v28  ;;  %v536_v10 = vmul.f32 %v512_v25, %v1079_v35 }
 0x329   : > { %558 = vst [vmem:[%s1111_s26 + $0xa8] sm:$0xff] %v534_v8  ;;  %559 = vst [vmem:[%s1111_s26 + $0xb0] sm:$0xff] %v535_v9 }
 0x32a   : > { %560 = vst [vmem:[%s1111_s26 + $0xb8] sm:$0xff] %v536_v10 }
 0x32b   : > { %798 = shalt.err (!%p795_p2)
}
 0x32c   : > { %s799_s6 = scalar_lea.hbm %s1154_s9, 3072  ;;  %s803_s17 = scalar_lea.hbm %s1209_s3, 6144 }
 0x32d   : > { %p800_p4 = scmp.ne.s32.totalorder %s1154_s9, %s799_s6  ;;  %p804_p9 = scmp.lt.u32.totalorder %s1154_s9, %s1209_s3 }
 0x32e   : > { %p805_p1 = scmp.lt.u32.totalorder %s803_s17, %s799_s6  ;;  %p807_p6 = scmp.lt.u32.totalorder %s799_s6, %s1154_s9 }
 0x32f   : > { %p801_p5 = pnand %p800_p4, %p1215_p11 }
 0x330   : > { %p806_p3 = por %p805_p1, %p804_p9 }
 0x331   : > { %p802_p7 = pneg %p801_p5 }
 0x332   : > { %p808_p12 = por %p807_p6, %p806_p3 }
 0x334   : > { %p809_p13 = pnand %p808_p12, %p802_p7 }
 0x336   : > { %812 = shalt.err (!%p809_p13)
}
 0x337   : > { %s860_s25 = smov 384   ;;  %s861_s26 = smov 24  }
 0x338   : > { %700 = dma.vmem_to_hbm [thread:$0]  (%p1215_p11), %s1156_s28, 3072, %s1154_s9, %s562_s16, %s860_s25, %s860_s25, %s861_s26  }
 0x339 PF: > { %s591_s27 = sand.u32 1, %s839_s12   ;;  %p1216_p8 = scmp.ne.s32.totalorder %s1213_s24, 0 }
 0x33a   : > { %p1217_p10 = scmp.ge.s32.totalorder %s851_s15, 2  ;;  %s592_s29 = scalar_lea.sflag [#allocation4], %s591_s27 }
 0x33c   : > { %p707_p0 = pnand %p1217_p10, %p1216_p8 }
 0x33e   : > { %834 = dma.done.wait (!%p707_p0), %s592_s29, 3072  }
 0x33f   : > { %836 = vsyncadd (!%p707_p0), %s592_s29, 4294964224  ;;  %p16_p2 = scmp.ge.s32.totalorder %s907_s18, 4   ;;  %s1218_s12 = smov %s843_s13 }
 0x340   : > { %s1219_s13 = smov %s847_s14  ;;  %s1220_s14 = smov %s919_s21 }
 0x341   : > { %s1221_s15 = smov %s907_s18  ;;  %18 = sbr.rel (!%p16_p2) target bundleno = 5 (0x5), region = 77 }
 0x348   :  { %597 = vsyncpa [#allocation3], 1 }
 0x349   :  { %599 = vsyncpa [#allocation3 + $0x1], 1 }
 0x34a   :  { %600 = vsyncpa [#allocation4], 1 }
 0x34b   :  { %602 = vsyncpa [#allocation4 + $0x1], 1 }

</bundles_post_ra>
